<compile_context>
chip_gen: v7x
topology: tpu7x:2x2x1
jax: 0.10.0
libtpu: 0.0.40
codegen_flags: <defaults>
</compile_context>

<pallas_src>
import functools

import jax
import jax.numpy as jnp
from jax.experimental import pallas as pl
from jax.experimental.pallas import tpu as pltpu


TARGET_BLOCK_ELEMS = 512 * 2048   # ~1M elems / grid step
MAX_BLOCK_ROWS = 512              # multiple of 8 (f32/i32), 16 (bf16) and 32 (int8)


def _snp_encoder_kernel(c_ref, x_ref, o_ref):
    # c_ref: (3,) f32 in SMEM, c_k = weight[k] + bias (precomputed in wrapper)
    # x_ref: (rb, cb) integer tile in VMEM, values in {0, 1, 2}
    # o_ref: (rb, cb) output tile in VMEM (f32 or bf16)
    x = x_ref[...]
    c0 = c_ref[0]
    c1 = c_ref[1]
    c2 = c_ref[2]
    # Two compares + two selects (DMA-bound kernel; VPU work is free filler).
    # Values outside {0,1,2} map to c2 (PyTorch's embedding would raise); this
    # also makes the garbage in masked ragged-edge blocks harmless.
    out = jnp.where(x == 0, c0, jnp.where(x == 1, c1, c2))
    o_ref[...] = out.astype(o_ref.dtype)


def _choose_block(B, L):
    """Pick a (rows, cols) block: lane-dense, legal tiling, ~TARGET_BLOCK_ELEMS."""
    # Row (sublane) dim: full batch if it fits, else an aligned 512-row tile.
    rb = B if B <= MAX_BLOCK_ROWS else MAX_BLOCK_ROWS
    # Lane dim: multiple of 128, or the full length (full dims are always legal).
    cb = max(TARGET_BLOCK_ELEMS // max(rb, 1), 128)
    cb = (cb // 128) * 128
    if cb >= L:
        cb = L
    # Megacore (v7x): keep >= 2 grid steps when the problem is big enough to care.
    if (pl.cdiv(B, rb) * pl.cdiv(L, cb)) < 2 and B * L >= (1 << 19) and L >= 256:
        cb = max(128, ((L // 2) // 128) * 128)
    return rb, cb


@functools.partial(jax.jit, static_argnames=("out_dtype",))
def snp_encoder(x, weight, bias, *, out_dtype=jnp.float32):
    """x: (B, L) ints in {0,1,2} (int32, or int8 for 1 B/elem reads);
    weight: (3,) f32; bias: (1,) f32  ->  (B, L) in `out_dtype`."""
    B, L = x.shape
    rb, cb = _choose_block(B, L)

    # Per-class constants: out = weight[x] + bias (bit-exact vs. the one-hot conv).
    c = (weight.reshape(-1).astype(jnp.float32)
         + bias.reshape(-1).astype(jnp.float32)[0])                       # (3,)

    bytes_accessed = B * L * (jnp.dtype(x.dtype).itemsize
                              + jnp.dtype(out_dtype).itemsize)

    return pl.pallas_call(
        _snp_encoder_kernel,
        out_shape=jax.ShapeDtypeStruct((B, L), out_dtype),
        grid_spec=pl.GridSpec(
            grid=(pl.cdiv(B, rb), pl.cdiv(L, cb)),
            in_specs=[
                pl.BlockSpec(memory_space=pltpu.SMEM),                    # c (3,)
                pl.BlockSpec((rb, cb), lambda i, j: (i, j)),              # x tile
            ],
            out_specs=pl.BlockSpec((rb, cb), lambda i, j: (i, j)),
        ),
        compiler_params=pltpu.CompilerParams(
            dimension_semantics=("parallel", "parallel"),
            vmem_limit_bytes=32 * 1024 * 1024,
        ),
        cost_estimate=pl.CostEstimate(
            flops=0, transcendentals=0, bytes_accessed=int(bytes_accessed)),
    )(c, x)


def snp_encoder_reference(x, weight, bias):
    """Pure-JAX reference mirroring the PyTorch forward literally."""
    oh = jax.nn.one_hot(x, 3, dtype=jnp.float32)                 # (B, L, 3)
    flat = oh.reshape(x.shape[0], 1, -1)                         # (B, 1, 3L)
    out = jax.lax.conv_general_dilated(
        flat, weight.reshape(1, 1, 3),
        window_strides=(3,), padding="VALID",
        dimension_numbers=("NCH", "OIH", "NCH"))                 # (B, 1, L)
    return out[:, 0, :] + bias[0]                                 # (B, L)


# TODO(synk): mode='LCL' (LocalLinear) is not defined in the provided source;
# only the 'convolution' mode is implemented.

if __name__ == "__main__":
    key = jax.random.PRNGKey(0)
    k_x, k_w, k_b, k_x2 = jax.random.split(key, 4)

    # Deterministic Conv1d(1,1,3) parameters (PyTorch init: U(-1/sqrt(3), 1/sqrt(3))).
    bound = 1.0 / jnp.sqrt(3.0)
    weight = jax.random.uniform(k_w, (3,), jnp.float32, -bound, bound)
    bias = jax.random.uniform(k_b, (1,), jnp.float32, -bound, bound)

    # Small synthetic SNP batch.
    B, L = 2, 384
    x = jax.random.randint(k_x, (B, L), 0, 3, dtype=jnp.int32)

    out = jax.block_until_ready(snp_encoder(x, weight, bias))
    ref = snp_encoder_reference(x, weight, bias)
    assert out.shape == (B, L) and out.dtype == jnp.float32, (out.shape, out.dtype)
    assert jnp.allclose(out, ref, atol=1e-6, rtol=1e-6), "mismatch vs reference"

    # Non-multiple-of-128 length: exercises the full-dim (masked-store) block path.
    B2, L2 = 3, 250
    x2 = jax.random.randint(k_x2, (B2, L2), 0, 3, dtype=jnp.int32)
    out2 = jax.block_until_ready(snp_encoder(x2, weight, bias))
    ref2 = snp_encoder_reference(x2, weight, bias)
    assert jnp.allclose(out2, ref2, atol=1e-6, rtol=1e-6), "mismatch vs reference (ragged)"

    print("KERNEL_OK")
</pallas_src>

<mosaic_0001>
module attributes {stable_mosaic.version = 11 : i64} {
  func.func @_snp_encoder_kernel(%arg0: i32, %arg1: i32, %arg2: memref<3xf32, #tpu.memory_space<smem>>, %arg3: memref<2x384xi32, #tpu.memory_space<vmem>>, %arg4: memref<2x384xf32, #tpu.memory_space<vmem>>) attributes {dimension_semantics = [#tpu.dimension_semantics<parallel>, #tpu.dimension_semantics<parallel>], iteration_bounds = array<i64: 1, 1>, scalar_prefetch = 0 : i64, scratch_operands = 0 : i64, tpu.core_type = #tpu.core_type<tc>, window_params = [{transform_indices = @transform_0, window_bounds = array<i64: 3>}, {transform_indices = @transform_1, window_bounds = array<i64: 2, 384>}, {transform_indices = @transform_2, window_bounds = array<i64: 2, 384>}]} {
    %c0 = arith.constant 0 : index
    %c0_0 = arith.constant 0 : index
    %0 = vector.load %arg3[%c0, %c0_0] : memref<2x384xi32, #tpu.memory_space<vmem>>, vector<2x384xi32>
    %c0_1 = arith.constant 0 : index
    %1 = memref.load %arg2[%c0_1] : memref<3xf32, #tpu.memory_space<smem>>
    %c1 = arith.constant 1 : index
    %2 = memref.load %arg2[%c1] : memref<3xf32, #tpu.memory_space<smem>>
    %c2 = arith.constant 2 : index
    %3 = memref.load %arg2[%c2] : memref<3xf32, #tpu.memory_space<smem>>
    %c0_i32 = arith.constant 0 : i32
    %4 = vector.broadcast %c0_i32 : i32 to vector<2x384xi32>
    %5 = arith.cmpi eq, %0, %4 : vector<2x384xi32>
    %c1_i32 = arith.constant 1 : i32
    %6 = vector.broadcast %c1_i32 : i32 to vector<2x384xi32>
    %7 = arith.cmpi eq, %0, %6 : vector<2x384xi32>
    %8 = vector.broadcast %2 : f32 to vector<2x384xf32>
    %9 = vector.broadcast %3 : f32 to vector<2x384xf32>
    %10 = arith.select %7, %8, %9 : vector<2x384xi1>, vector<2x384xf32>
    %11 = vector.broadcast %1 : f32 to vector<2x384xf32>
    %12 = arith.select %5, %11, %10 : vector<2x384xi1>, vector<2x384xf32>
    %c0_2 = arith.constant 0 : index
    %c0_3 = arith.constant 0 : index
    %13 = vector.load %arg4[%c0_2, %c0_3] : memref<2x384xf32, #tpu.memory_space<vmem>>, vector<2x384xf32>
    tpu.vector_store %arg4[%c0_2, %c0_3], %12 {strides = array<i32>} : memref<2x384xf32, #tpu.memory_space<vmem>>, vector<2x384xf32>,
    return
  }
  func.func @transform_0(%arg0: i32, %arg1: i32) -> i32 {
    %c0_i32 = arith.constant 0 : i32
    %c0_i32_0 = arith.constant 0 : i32
    return %c0_i32 : i32
  }
  func.func @transform_1(%arg0: i32, %arg1: i32) -> (i32, i32) {
    %c0_i32 = arith.constant 0 : i32
    return %arg0, %arg1 : i32, i32
  }
  func.func @transform_2(%arg0: i32, %arg1: i32) -> (i32, i32) {
    %c0_i32 = arith.constant 0 : i32
    return %arg0, %arg1 : i32, i32
  }
}

</mosaic_0001>

<bundles_post_ra>
// kernel: snp_encoder.1
= control target key start
LH: loop header
LB: loop body
LE: loop exit
PB: predicated region body
PF: predicated region fallthrough
CT: control target
= control target key end

     0   :  { %7 = vsyncpa [#allocation4], 0  ;;  %s129_s0 = inlined_call_operand.vmem [shape: f32[3], index: 0, kind: input, shape index: {}]   ;;  %s130_s1 = inlined_call_operand.vmem [shape: s32[2,384], index: 1, kind: input, shape index: {}]   ;;  %s131_s2 = inlined_call_operand.hbm [shape: f32[2,384], index: 2, kind: output, shape index: {}]  }
   0x1   :  { %8 = vsyncpa [#allocation3], 0  ;;  %s15_s11 = sshll.u32 %s129_s0, 4  ;;  %s16_s11 = int_to_ptr.vmem [resolvable:$true] %s15_s11 }
   0x2   :  { %s56_s12 = scalar_lea.vmem %s16_s11, 16  ;;  %p61_p1 = scmp.lt.s32.totalorder %s16_s11, %s16_s11 }
   0x3   :  { %p57_p0 = scmp.ne.s32.totalorder %s16_s11, %s56_s12  ;;  %p62_p2 = scmp.lt.s32.totalorder %s56_s12, %s56_s12 }
   0x5   :  { %p63_p3 = por %p62_p2, %p61_p1 }
   0x7   :  { %p64_p4 = pnand %p63_p3, %p57_p0 }
   0x9   :  { %67 = shalt.err (!%p64_p4)
}
   0xa   :  { %s94_s13 = smov [#allocation2]  }
   0xb   :  { %18 = dma.vmem_to_smem %s16_s11, 16, %s94_s13, [#allocation4]  }
   0xc   :  { %90 = dma.done.wait [#allocation4], 16  }
   0xd   :  { %91 = vsyncadd [#allocation4], 4294967280 }
   0xe   :  { %24 = sfence }
   0xf   :  { %s26_s14 = sld [smem:[#allocation2]]  ;;  %s52_s15 = sld [smem:[#allocation2 + $0x1]]  ;;  %v25_v0 = vld [vmem:[%s130_s1] sm:$0x3f] }
  0x10   :  { %s53_s16 = sld [smem:[#allocation2 + $0x2]]  ;;  %vm30_vm0 = vcmp.eq.s32.totalorder %v25_v0, 1  ;;  %s95_s0 = smov [#allocation5]   ;;  %vm29_vm1 = vcmp.eq.s32.totalorder %v25_v0, 0 }
  0x11   :  { %s43_s19 = sshll.u32 %s95_s0, 4  ;;  %s44_s19 = int_to_ptr.vmem [resolvable:$true] %s43_s19 }
  0x12   :  { %s68_s20 = scalar_lea.vmem %s44_s19, 96  ;;  %p73_p6 = scmp.lt.s32.totalorder %s44_s19, %s44_s19 }
  0x13   :  { %p69_p5 = scmp.ne.s32.totalorder %s44_s19, %s68_s20  ;;  %p74_p7 = scmp.lt.s32.totalorder %s68_s20, %s68_s20 }
  0x15   :  { %v31_v1 = vstv %s52_s15  ;;  %v34_v2 = vstv %s26_s14  ;;  %p75_p8 = por %p74_p7, %p73_p6 }
  0x16   :  { %v32_v3 = vstv %s53_s16 }
  0x17   :  { %v33_v4 = vsel %vm30_vm0, %v31_v1, %v32_v3  ;;  %p76_p9 = pnand %p75_p8, %p69_p5 }
  0x18   :  { %v35_v5 = vsel %vm29_vm1, %v34_v2, %v33_v4 }
  0x19   :  { %36 = vst [vmem:[#allocation5] sm:$0x3f] %v35_v5 }
  0x1a   :  { %79 = shalt.err (!%p76_p9)
}
  0x1b   :  { %s80_s22 = scalar_lea.hbm %s131_s2, 96 }
  0x1c   :  { %p81_p10 = scmp.ne.s32.totalorder %s131_s2, %s80_s22  ;;  %p84_p11 = scmp.lt.u32.totalorder %s80_s22, %s131_s2 }
  0x1e   :  { %p86_p12 = pnand %p84_p11, %p81_p10 }
  0x20   :  { %89 = shalt.err (!%p86_p12)
}
  0x21   :  { %46 = dma.vmem_to_hbm [thread:$0]  %s44_s19, 96, %s131_s2, [#allocation3]  }
  0x22   :  { %92 = dma.done.wait [#allocation3], 96  }
  0x23   :  { %93 = vsyncadd [#allocation3], 4294967200 }
  0x24   :  { %50 = vsyncpa [#allocation3], 1 }
  0x25   :  { %51 = vsyncpa [#allocation4], 1 }

</bundles_post_ra>
